<compile_context>
chip_gen: v7x
topology: tpu7x:2x2x1
jax: 0.10.0
libtpu: 0.0.40
codegen_flags: <defaults>
</compile_context>

<pallas_src>
import math
from functools import partial

import jax
import jax.numpy as jnp
from jax import lax
from jax.experimental import pallas as pl
from jax.experimental.pallas import tpu as pltpu


def _build_pe(max_seq_len: int, d_model: int) -> jnp.ndarray:
    """Sinusoidal positional-encoding buffer, shape (max_seq_len, 1, d_model)."""
    position = jnp.arange(0, max_seq_len, dtype=jnp.float32)[:, None]          # (L, 1)
    div_term = jnp.exp(
        jnp.arange(0, d_model, 2, dtype=jnp.float32) * (-math.log(10000.0) / d_model)
    )                                                                           # (D/2,)
    pe = jnp.zeros((max_seq_len, d_model), dtype=jnp.float32)
    pe = pe.at[:, 0::2].set(jnp.sin(position * div_term))
    pe = pe.at[:, 1::2].set(jnp.cos(position * div_term))
    return pe[:, None, :]    # unsqueeze(0).transpose(0,1) -> (L, 1, D)


def _sublane_multiple(dtype) -> int:
    # minimum sublane tile per dtype width (f32: 8, bf16: 16, int8/fp8: 32)
    return {4: 8, 2: 16, 1: 32}.get(jnp.dtype(dtype).itemsize, 8)


def _vmem_capacity_bytes() -> int:
    try:
        return int(pltpu.get_tpu_info().vmem_capacity_bytes)
    except Exception:
        return 64 * 1024 * 1024   # conservative (v7x-sized) fallback


def _choose_tiles(B, G, Wp, itemsize, sub_g, target_bytes, min_bytes, prefer_even):
    """Pick (tb, tg) for an x block of shape (tb, tg, Wp).

    Constraints honored:
      * tg (second-to-last dim of the x block) is a multiple of the dtype sublane
        tile, or == G when G is tiny.
      * tb (second-to-last dim of the f32 pe block) is a multiple of 8, or == B.
    Goals: block ~= target_bytes, and >= 4 grid steps (even on v7x) when the
    array is large enough for pipelining/megacore to matter.
    """
    def snap_tb(t):
        if B <= 8 or t >= B:
            return B
        return max(8, (t // 8) * 8)

    def snap_tg(t):
        if G <= sub_g:
            return G
        t = min(t, G)
        return max(sub_g, (t // sub_g) * sub_g)

    row = G * Wp * itemsize                          # one batch row, all groups
    if row <= target_bytes:
        tg = snap_tg(G)
        tb = snap_tb(max(1, target_bytes // row))
    else:
        tb = snap_tb(1)
        tg = snap_tg(max(1, target_bytes // (tb * Wp * itemsize)))

    def nsteps(tb_, tg_):
        return pl.cdiv(B, tb_) * pl.cdiv(G, tg_)

    # Expose >= 4 grid steps (DMA/compute/writeback overlap, TC sharding) as long
    # as blocks stay comfortably above min_bytes.
    for _ in range(16):
        if nsteps(tb, tg) >= 4 or tb * tg * Wp * itemsize < 2 * min_bytes:
            break
        if tg > sub_g:
            new_tg = snap_tg(tg // 2)
            if new_tg == tg:
                break
            tg = new_tg
        elif tb > 8:
            new_tb = snap_tb(tb // 2)
            if new_tb == tb:
                break
            tb = new_tb
        else:
            break

    # v7x megacore: prefer an even total step count so neither TensorCore idles.
    if prefer_even and nsteps(tb, tg) > 1 and nsteps(tb, tg) % 2 == 1:
        cand, tries = tg, 0
        while cand > sub_g and tries < 64:
            cand = snap_tg(cand - sub_g)
            tries += 1
            if (pl.cdiv(B, tb) * pl.cdiv(G, cand)) % 2 == 0 and \
               tb * cand * Wp * itemsize >= min_bytes:
                tg = cand
                break

    return tb, tg


def _pos_enc_kernel(x_ref, pe_ref, o_ref, *, inner_tile, n_inner, unroll):
    # x_ref / o_ref : (tb, tg, Wp) lane-dense block.  pe_ref : (tb, Wp) f32.
    # One small (tb, inner_tile, Wp) pe slab is built once (hoisted out of the
    # loop) and reused for every inner step — no x-block-sized pe temp, no
    # N-operand concatenate.  Add runs in f32, cast to output dtype on store.
    tb, w = pe_ref.shape
    pe = jnp.broadcast_to(pe_ref[...][:, None, :], (tb, inner_tile, w))

    if n_inner == 1:
        o_ref[...] = (x_ref[...] + pe).astype(o_ref.dtype)
        return

    def body(g, carry):
        off = pl.multiple_of(g * inner_tile, inner_tile)
        sl = pl.ds(off, inner_tile)
        o_ref[:, sl, :] = (x_ref[:, sl, :] + pe).astype(o_ref.dtype)
        return carry

    lax.fori_loop(0, n_inner, body, 0, unroll=unroll)


def positional_encoder(x: jnp.ndarray, pe: jnp.ndarray, *,
                       target_block_bytes: int | None = None,
                       min_block_bytes: int = 512 * 1024) -> jnp.ndarray:
    """x: [B, S, D], pe: [max_seq_len, 1, D]. Returns x + pe[:B, :] (broadcast over S)."""
    B, S, D = x.shape
    assert pe.shape[0] >= B, "batch size exceeds the positional-encoding buffer length"

    pe_b = pe[:B, 0, :].astype(jnp.float32)            # (B, D) f32 — tiny

    # Lane-dense layout: group the flattened (seq, fea) axis into rows of width
    # Wp = lcm(D, 128) so stores are full-lane/unmasked and the pe broadcast period
    # equals the block lane width.  Falls back to Wp = D when lcm(D,128) does not
    # divide S*D (correct, but stores may be masked when D < 128).
    Wp = (D * 128) // math.gcd(D, 128)
    if (S * D) % Wp != 0:
        Wp = D
    reps = Wp // D
    G = (S * D) // Wp
    x3 = x.reshape(B, G, Wp)                           # free, row-major view
    pe_w = jnp.tile(pe_b, (1, reps)) if reps > 1 else pe_b   # (B, Wp) f32, ~B*Wp*4 bytes

    # Per-generation budgets: v7x-class (64 MiB VMEM/TC) -> 4 MiB blocks, 48 MiB limit;
    # v5e/v6e (128 MiB VMEM) -> 8 MiB blocks, 64 MiB limit.
    vmem_cap = _vmem_capacity_bytes()
    small_vmem = vmem_cap <= 64 * 1024 * 1024
    if target_block_bytes is None:
        target_block_bytes = (4 << 20) if small_vmem else (8 << 20)
    vmem_limit = (48 << 20) if small_vmem else (64 << 20)

    itemsize = jnp.dtype(x.dtype).itemsize
    sub_g = _sublane_multiple(x.dtype)
    tb, tg = _choose_tiles(B, G, Wp, itemsize, sub_g,
                           target_block_bytes, min_block_bytes,
                           prefer_even=small_vmem)
    n_b, n_g = pl.cdiv(B, tb), pl.cdiv(G, tg)

    # Inner (sublane-group) tile: a divisor of tg that is a multiple of the sublane
    # tile, sized so each loop iteration moves ~<=64 KiB of x (vreg-friendly).
    if tg % sub_g != 0:                # only when G <= sub_g (tiny block): single shot
        gi = tg
    else:
        m = tg // sub_g
        per_unit = tb * sub_g * Wp * itemsize
        d = max(1, min(m, (64 * 1024) // max(per_unit, 1)))
        while m % d:
            d -= 1
        gi = d * sub_g
    n_inner = tg // gi
    unroll = n_inner if n_inner <= 8 else 1

    kernel = partial(_pos_enc_kernel, inner_tile=gi, n_inner=n_inner, unroll=unroll)

    # VMEM plan: double-buffered x-in and out blocks = 4 * tb*tg*Wp*itemsize, plus a
    # double-buffered (tb, Wp) f32 pe block and a <= ~64 KiB in-kernel pe slab
    # -> <= ~4 * target_block_bytes + small, under vmem_limit on every generation.
    out3 = pl.pallas_call(
        kernel,
        out_shape=jax.ShapeDtypeStruct((B, G, Wp), x.dtype),
        grid_spec=pltpu.PrefetchScalarGridSpec(
            num_scalar_prefetch=0,
            grid=(n_b, n_g),       # group axis innermost: pe block stays resident per batch tile
            in_specs=[
                pl.BlockSpec((tb, tg, Wp), lambda i, j: (i, j, 0)),
                pl.BlockSpec((tb, Wp), lambda i, j: (i, 0)),
            ],
            out_specs=pl.BlockSpec((tb, tg, Wp), lambda i, j: (i, j, 0)),
        ),
        compiler_params=pltpu.CompilerParams(
            dimension_semantics=("parallel", "parallel"),
            vmem_limit_bytes=vmem_limit,
        ),
        input_output_aliases={0: 0},   # x is dead after the add: reuse its HBM buffer
    )(x3, pe_w)

    return out3.reshape(B, S, D)


if __name__ == "__main__":
    # Demo at the module's natural small shape.
    B, S, D = 2, 8, 32          # batch, series_length, fea_dim (== d_model)
    MAX_SEQ_LEN = 512

    key = jax.random.PRNGKey(0)
    x = jax.random.normal(key, (B, S, D), dtype=jnp.float32)
    pe = _build_pe(MAX_SEQ_LEN, D)

    out = jax.block_until_ready(positional_encoder(x, pe))

    # Reference in plain JAX (same broadcast quirk as the PyTorch module).
    ref = x + pe[:B, :]
    assert out.shape == (B, S, D)
    assert jnp.allclose(out, ref, atol=1e-6), "mismatch vs reference (f32)"

    # Extra robustness check: bf16 input and a batch count that is not a multiple of
    # the batch tile (exercises partial blocks and the f32-accumulate / cast-on-store
    # path).  The small target_block_bytes override just forces a multi-step grid.
    xb = jax.random.normal(jax.random.PRNGKey(1), (20, 256, 32), dtype=jnp.bfloat16)
    peb = _build_pe(64, 32)
    outb = jax.block_until_ready(
        positional_encoder(xb, peb, target_block_bytes=32 * 1024))
    refb = (xb.astype(jnp.float32) + peb[:20, :]).astype(jnp.bfloat16)
    assert outb.shape == xb.shape and outb.dtype == xb.dtype
    assert jnp.allclose(outb.astype(jnp.float32), refb.astype(jnp.float32),
                        atol=1e-2), "mismatch vs reference (bf16)"

    print("KERNEL_OK")
</pallas_src>

<mosaic_0001>
module attributes {stable_mosaic.version = 11 : i64} {
  func.func @_pos_enc_kernel(%arg0: i32, %arg1: i32, %arg2: memref<2x2x128xf32, #tpu.memory_space<vmem>>, %arg3: memref<2x128xf32, #tpu.memory_space<vmem>>, %arg4: memref<2x2x128xf32, #tpu.memory_space<vmem>>) attributes {dimension_semantics = [#tpu.dimension_semantics<parallel>, #tpu.dimension_semantics<parallel>], iteration_bounds = array<i64: 1, 1>, scalar_prefetch = 0 : i64, scratch_operands = 0 : i64, tpu.core_type = #tpu.core_type<tc>, window_params = [{transform_indices = @transform_0, window_bounds = array<i64: 2, 2, 128>}, {transform_indices = @transform_1, window_bounds = array<i64: 2, 128>}, {transform_indices = @transform_2, window_bounds = array<i64: 2, 2, 128>}]} {
    %c0 = arith.constant 0 : index
    %c0_0 = arith.constant 0 : index
    %0 = vector.load %arg3[%c0, %c0_0] : memref<2x128xf32, #tpu.memory_space<vmem>>, vector<2x128xf32>
    %1 = vector.shape_cast %0 : vector<2x128xf32> to vector<2x1x128xf32>
    %2 = vector.shape_cast %1 : vector<2x1x128xf32> to vector<2x1x128xf32>
    %3 = vector.broadcast %2 : vector<2x1x128xf32> to vector<2x2x128xf32>
    %c0_1 = arith.constant 0 : index
    %c0_2 = arith.constant 0 : index
    %c0_3 = arith.constant 0 : index
    %4 = vector.load %arg2[%c0_1, %c0_2, %c0_3] : memref<2x2x128xf32, #tpu.memory_space<vmem>>, vector<2x2x128xf32>
    %5 = arith.addf %4, %3 : vector<2x2x128xf32>
    %c0_4 = arith.constant 0 : index
    %c0_5 = arith.constant 0 : index
    %c0_6 = arith.constant 0 : index
    %6 = vector.load %arg4[%c0_4, %c0_5, %c0_6] : memref<2x2x128xf32, #tpu.memory_space<vmem>>, vector<2x2x128xf32>
    tpu.vector_store %arg4[%c0_4, %c0_5, %c0_6], %5 {strides = array<i32>} : memref<2x2x128xf32, #tpu.memory_space<vmem>>, vector<2x2x128xf32>,
    return
  }
  func.func @transform_0(%arg0: i32, %arg1: i32) -> (i32, i32, i32) {
    %c0_i32 = arith.constant 0 : i32
    %c0_i32_0 = arith.constant 0 : i32
    return %arg0, %arg1, %c0_i32 : i32, i32, i32
  }
  func.func @transform_1(%arg0: i32, %arg1: i32) -> (i32, i32) {
    %c0_i32 = arith.constant 0 : i32
    %c0_i32_0 = arith.constant 0 : i32
    return %arg0, %c0_i32 : i32, i32
  }
  func.func @transform_2(%arg0: i32, %arg1: i32) -> (i32, i32, i32) {
    %c0_i32 = arith.constant 0 : i32
    %c0_i32_0 = arith.constant 0 : i32
    return %arg0, %arg1, %c0_i32 : i32, i32, i32
  }
}

</mosaic_0001>

<bundles_post_ra>
// kernel: tpu_custom_call.1
= control target key start
LH: loop header
LB: loop body
LE: loop exit
PB: predicated region body
PF: predicated region fallthrough
CT: control target
= control target key end

     0   :  { %7 = vsyncpa [#allocation3], 0  ;;  %s190_s0 = inlined_call_operand.hbm [shape: f32[2,2,128], index: 0, kind: input, shape index: {}, may-alias: {0,2}]   ;;  %s191_s1 = inlined_call_operand.vmem [shape: f32[2,128], index: 1, kind: input, shape index: {}]   ;;  %s192_s2 = inlined_call_operand.hbm [shape: f32[2,2,128], index: 2, kind: output, shape index: {}, may-alias: {0,2}]  }
   0x1   :  { %8 = vsyncpa [#allocation4], 0  ;;  %s137_s9 = smov [#allocation2]   ;;  %s89_s13 = scalar_lea.hbm %s190_s0, 64 }
   0x2   :  { %s14_s10 = sshll.u32 %s137_s9, 4  ;;  %p90_p0 = scmp.ne.s32.totalorder %s190_s0, %s89_s13  ;;  %s15_s10 = int_to_ptr.vmem [resolvable:$true] %s14_s10 }
   0x3   :  { %p93_p1 = scmp.lt.u32.totalorder %s89_s13, %s190_s0 }
   0x5   :  { %p95_p2 = pnand %p93_p1, %p90_p0 }
   0x7   :  { %98 = shalt.err (!%p95_p2)
}
   0x8   :  { %s99_s18 = scalar_lea.vmem %s15_s10, 64  ;;  %p104_p4 = scmp.lt.s32.totalorder %s15_s10, %s15_s10 }
   0x9   :  { %p100_p3 = scmp.ne.s32.totalorder %s15_s10, %s99_s18  ;;  %p105_p5 = scmp.lt.s32.totalorder %s99_s18, %s99_s18 }
   0xb   :  { %p106_p6 = por %p105_p5, %p104_p4 }
   0xd   :  { %p107_p7 = pnand %p106_p6, %p100_p3 }
   0xf   :  { %110 = shalt.err (!%p107_p7)
}
  0x10   :  { %s138_s19 = smov 32   ;;  %s139_s20 = smov 2  }
  0x11   :  { %20 = dma.hbm_to_vmem [thread:$0]  %s190_s0, 64, %s15_s10, [#allocation3], %s138_s19, %s138_s19, %s139_s20  }
  0x12   :  { %133 = dma.done.wait [#allocation3], 64  }
  0x13   :  { %134 = vsyncadd [#allocation3], 4294967232  ;;  %v39_v0 = vlaneseq  ;;  %v140_v1 = vmov 1966171168   ;;  %v60_v10 = vld [vmem:[#allocation2] sm:$0x3] }
  0x14   :  { %v37_v2 = vunpack.c.l.s4 %v140_v1  ;;  %v83_v7 = vld.sshfl [vmem:[%s191_s1] sm:$0x11 pattern:$0x75316420]  ;;  %v61_v13 = vld [vmem:[#allocation2 + $0x2] sm:$0x3] }
  0x15   :  { %v40_v3 = vshrl.u32 %v39_v0, 7  ;;  %v35_v9 = vcombine.high %v83_v7, %v83_v7  ;;  %s141_s0 = smov [#allocation5]  }
  0x16   :  { %v38_v4 = vunpack.c.0.s8 %v37_v2  ;;  %s71_s25 = sshll.u32 %s141_s0, 4  ;;  %s72_s25 = int_to_ptr.vmem [resolvable:$true] %s71_s25 }
  0x17   :  { %v52_v6 = vsub.s32 0, %v40_v3  ;;  %s111_s26 = scalar_lea.vmem %s72_s25, 64  ;;  %p116_p9 = scmp.lt.s32.totalorder %s72_s25, %s72_s25 }
  0x18   :  { %v41_v5 = vsub.s32 %v38_v4, %v40_v3  ;;  %p112_p8 = scmp.ne.s32.totalorder %s72_s25, %s111_s26  ;;  %p117_p10 = scmp.lt.s32.totalorder %s111_s26, %s111_s26 }
  0x1a   :  { %v42_v8 = vrot.slane %v83_v7, %v41_v5  ;;  %v49_v12 = vrot.slane %v35_v9, %v41_v5  ;;  %p118_p11 = por %p117_p10, %p116_p9 }
  0x1c   :  { %v53_v11 = vrot.slane %v42_v8, %v52_v6  ;;  %v57_v15 = vrot.slane %v49_v12, %v52_v6  ;;  %p119_p12 = pnand %p118_p11, %p112_p8 }
  0x1e   :  { %v62_v14 = vadd.f32 %v60_v10, %v53_v11  ;;  %v63_v16 = vadd.f32 %v61_v13, %v57_v15 }
  0x20   :  { %64 = vst [vmem:[#allocation5] sm:$0x3] %v62_v14  ;;  %65 = vst [vmem:[#allocation5 + $0x2] sm:$0x3] %v63_v16 }
  0x21   :  { %122 = shalt.err (!%p119_p12)
}
  0x22   :  { %s123_s28 = scalar_lea.hbm %s192_s2, 64 }
  0x23   :  { %p124_p13 = scmp.ne.s32.totalorder %s192_s2, %s123_s28  ;;  %p127_p0 = scmp.lt.u32.totalorder %s123_s28, %s192_s2 }
  0x25   :  { %p129_p1 = pnand %p127_p0, %p124_p13 }
  0x27   :  { %132 = shalt.err (!%p129_p1)
}
  0x28   :  { %77 = dma.vmem_to_hbm [thread:$0]  %s72_s25, 64, %s192_s2, [#allocation4], %s138_s19, %s138_s19, %s139_s20  }
  0x29   :  { %135 = dma.done.wait [#allocation4], 64  }
  0x2a   :  { %136 = vsyncadd [#allocation4], 4294967232 }
  0x2b   :  { %81 = vsyncpa [#allocation3], 1 }
  0x2c   :  { %82 = vsyncpa [#allocation4], 1 }

</bundles_post_ra>
